<compile_context>
chip_gen: v5e
topology: v5e:2x2
jax: 0.10.0
libtpu: 0.0.40
codegen_flags: <defaults>
</compile_context>

<pallas_src>
import jax
import jax.numpy as jnp
from jax.experimental import pallas as pl
from jax.experimental.pallas import tpu as pltpu

EMBED_DIM = 32
HIDDEN_DIM = 32
VOCAB_SIZE = 50
IPRO_SIZE = 10
TAGSET_SIZE = 8      # `tagset_size` is a module-level global in the original code
SEQ_LEN = 8
LANES = 128          # 4*HIDDEN_DIM gate width; also the padded logits width
NEG_BIG = -1e30      # bias for padded logit lanes -> exp() underflows to exactly 0


def lstm_tagger_kernel(ids_ref, xw_tbl_ref, w_pack_ref, out_ref):
    """In-kernel embedding/input-projection gather -> unrolled LSTM -> Linear + softmax."""
    H = HIDDEN_DIM

    w_hh = w_pack_ref[0:H, :]                  # (H, 4H)   rows  0..31
    w_out = w_pack_ref[H:2 * H, :]             # (H, 128)  rows 32..63  (W_out^T zero-padded)
    b_out = w_pack_ref[2 * H:2 * H + 1, :]     # (1, 128)  row  64      (pad lanes = NEG_BIG)

    # initial hidden/cell state = zeros (matches init_hidden()); kept in vregs.
    h = jnp.zeros((1, H), jnp.float32)
    c = jnp.zeros((1, H), jnp.float32)

    # Fully unrolled recurrence: one (1,H)x(H,4H) MXU matmul + 3 EUP passes per step.
    for t in range(SEQ_LEN):
        # Gather precomputed x@W_ih^T + (b_ih+b_hh) row for token t (ids live in SMEM).
        xw_t = xw_tbl_ref[pl.ds(ids_ref[t], 1), :]                               # (1, 4H)
        gates = xw_t + jnp.dot(h, w_hh, preferred_element_type=jnp.float32)      # (1, 4H)
        sig = jax.nn.sigmoid(gates)        # i/f/o gates in one full-width EUP pass
        tnh = jnp.tanh(gates)              # g gate       in one full-width EUP pass
        i_g = sig[:, 0 * H:1 * H]
        f_g = sig[:, 1 * H:2 * H]
        g_g = tnh[:, 2 * H:3 * H]
        o_g = sig[:, 3 * H:4 * H]
        c = f_g * c + i_g * g_g
        h = o_g * jnp.tanh(c)

    # lstm_out[len(sentence)-1] == last hidden state for a 1-layer unidirectional LSTM.
    logits = jnp.dot(h, w_out, preferred_element_type=jnp.float32) + b_out       # (1, 128)
    m = jnp.max(logits, axis=-1, keepdims=True)
    e = jnp.exp(logits - m)                 # padded lanes: exp(~-1e30) == 0
    out_ref[...] = e / jnp.sum(e, axis=-1, keepdims=True)   # full-lane unmasked store


def init_params(key):
    ks = jax.random.split(key, 8)
    s = 1.0 / jnp.sqrt(HIDDEN_DIM)
    word_emb = jax.random.normal(ks[0], (VOCAB_SIZE, EMBED_DIM), jnp.float32)
    ipro_emb = jax.random.normal(ks[1], (IPRO_SIZE, EMBED_DIM), jnp.float32)  # unused in forward()
    w_ih = jax.random.uniform(ks[2], (4 * HIDDEN_DIM, EMBED_DIM), jnp.float32, -s, s)
    w_hh = jax.random.uniform(ks[3], (4 * HIDDEN_DIM, HIDDEN_DIM), jnp.float32, -s, s)
    b_ih = jax.random.uniform(ks[4], (4 * HIDDEN_DIM,), jnp.float32, -s, s)
    b_hh = jax.random.uniform(ks[5], (4 * HIDDEN_DIM,), jnp.float32, -s, s)
    w_out = jax.random.uniform(ks[6], (TAGSET_SIZE, HIDDEN_DIM), jnp.float32, -s, s)
    b_out = jax.random.uniform(ks[7], (TAGSET_SIZE,), jnp.float32, -s, s)

    # One-time precompute: fused embedding + input projection + bias table (25 KB, cacheable).
    xw_table = word_emb @ w_ih.T + (b_ih + b_hh)[None, :]             # (VOCAB, 4H) = (50, 128)

    # Single lane-dense parameter pack: [W_hh^T ; W_out^T (lane-padded) ; b_out (lane-padded)].
    w_out_pad = jnp.zeros((HIDDEN_DIM, LANES), jnp.float32).at[:, :TAGSET_SIZE].set(w_out.T)
    b_out_pad = jnp.full((1, LANES), NEG_BIG, jnp.float32).at[0, :TAGSET_SIZE].set(b_out)
    w_pack = jnp.concatenate([w_hh.T, w_out_pad, b_out_pad], axis=0)  # (2H+1, 128) = (65, 128)

    return dict(word_emb=word_emb, ipro_emb=ipro_emb,
                xw_table=xw_table, w_pack=w_pack,
                # unpacked copies kept only for the pure-JAX reference
                w_ih_t=w_ih.T, w_hh_t=w_hh.T, b=(b_ih + b_hh)[None, :],
                w_out_t=w_out.T, b_out=b_out[None, :])


def lstm_tagger_forward(sentence, params):
    vmem = pl.BlockSpec(memory_space=pltpu.MemorySpace.VMEM)
    smem = pl.BlockSpec(memory_space=pltpu.MemorySpace.SMEM)
    out_padded = pl.pallas_call(
        lstm_tagger_kernel,
        out_shape=jax.ShapeDtypeStruct((1, LANES), jnp.float32),   # lane-dense output slab
        in_specs=[smem, vmem, vmem],
        out_specs=vmem,
    )(sentence, params["xw_table"], params["w_pack"])
    return out_padded[:, :TAGSET_SIZE]


def reference_forward(sentence, params):
    """Pure-JAX reference mirroring the PyTorch forward, for verification."""
    H = HIDDEN_DIM
    embeds = params["word_emb"][sentence]
    h = jnp.zeros((1, H), jnp.float32)
    c = jnp.zeros((1, H), jnp.float32)
    for t in range(SEQ_LEN):
        g = embeds[t:t + 1] @ params["w_ih_t"] + h @ params["w_hh_t"] + params["b"]
        i_g = jax.nn.sigmoid(g[:, 0 * H:1 * H])
        f_g = jax.nn.sigmoid(g[:, 1 * H:2 * H])
        g_g = jnp.tanh(g[:, 2 * H:3 * H])
        o_g = jax.nn.sigmoid(g[:, 3 * H:4 * H])
        c = f_g * c + i_g * g_g
        h = o_g * jnp.tanh(c)
    logits = h @ params["w_out_t"] + params["b_out"]
    return jax.nn.softmax(logits, axis=-1)


if __name__ == "__main__":
    key = jax.random.PRNGKey(0)
    pkey, skey = jax.random.split(key)
    params = init_params(pkey)
    sentence = jax.random.randint(skey, (SEQ_LEN,), 0, VOCAB_SIZE, dtype=jnp.int32)

    out = jax.block_until_ready(lstm_tagger_forward(sentence, params))
    ref = jax.block_until_ready(reference_forward(sentence, params))

    assert out.shape == (1, TAGSET_SIZE)
    assert jnp.allclose(out, ref, atol=1e-5, rtol=1e-5), (out, ref)
    print("KERNEL_OK")
</pallas_src>

<mosaic_0001>
module attributes {stable_mosaic.version = 11 : i64} {
  func.func @lstm_tagger_kernel(%arg0: memref<8xi32, #tpu.memory_space<smem>>, %arg1: memref<50x128xf32, #tpu.memory_space<vmem>>, %arg2: memref<65x128xf32, #tpu.memory_space<vmem>>, %arg3: memref<1x128xf32, #tpu.memory_space<vmem>>) attributes {dimension_semantics = [], scalar_prefetch = 0 : i64, scratch_operands = 0 : i64, tpu.core_type = #tpu.core_type<tc>} {
    %c0 = arith.constant 0 : index
    %c0_0 = arith.constant 0 : index
    %0 = vector.load %arg2[%c0, %c0_0] : memref<65x128xf32, #tpu.memory_space<vmem>>, vector<32x128xf32>
    %c32 = arith.constant 32 : index
    %c0_1 = arith.constant 0 : index
    %1 = vector.load %arg2[%c32, %c0_1] : memref<65x128xf32, #tpu.memory_space<vmem>>, vector<32x128xf32>
    %c64 = arith.constant 64 : index
    %c0_2 = arith.constant 0 : index
    %2 = vector.load %arg2[%c64, %c0_2] : memref<65x128xf32, #tpu.memory_space<vmem>>, vector<1x128xf32>
    %cst = arith.constant 0.000000e+00 : f32
    %3 = vector.broadcast %cst : f32 to vector<1x32xf32>
    %cst_3 = arith.constant 0.000000e+00 : f32
    %4 = vector.broadcast %cst_3 : f32 to vector<1x32xf32>
    %c0_4 = arith.constant 0 : index
    %5 = memref.load %arg0[%c0_4] : memref<8xi32, #tpu.memory_space<smem>>
    %6 = arith.index_cast %5 : i32 to index
    %c0_5 = arith.constant 0 : index
    %7 = vector.load %arg1[%6, %c0_5] : memref<50x128xf32, #tpu.memory_space<vmem>>, vector<1x128xf32>
    %cst_6 = arith.constant dense<0.000000e+00> : vector<1x128xf32>
    %8 = tpu.matmul %3, %0, %cst_6 {dimension_numbers = #tpu.dot_dimension_numbers<[1], [0], [0], [1], [0, 0, 1, 1], [], []>} : vector<1x32xf32>, vector<32x128xf32>, vector<1x128xf32> -> vector<1x128xf32>
    %9 = arith.addf %7, %8 : vector<1x128xf32>
    %10 = arith.negf %9 : vector<1x128xf32>
    %11 = math.exp %10 : vector<1x128xf32>
    %cst_7 = arith.constant 1.000000e+00 : f32
    %12 = vector.broadcast %cst_7 : f32 to vector<1x128xf32>
    %13 = arith.addf %12, %11 : vector<1x128xf32>
    %14 = arith.divf %12, %13 : vector<1x128xf32>
    %15 = math.tanh %9 : vector<1x128xf32>
    %16 = vector.extract_strided_slice %14 {offsets = [0, 0], sizes = [1, 32], strides = [1, 1]} : vector<1x128xf32> to vector<1x32xf32>
    %17 = vector.extract_strided_slice %14 {offsets = [0, 32], sizes = [1, 32], strides = [1, 1]} : vector<1x128xf32> to vector<1x32xf32>
    %18 = vector.extract_strided_slice %15 {offsets = [0, 64], sizes = [1, 32], strides = [1, 1]} : vector<1x128xf32> to vector<1x32xf32>
    %19 = vector.extract_strided_slice %14 {offsets = [0, 96], sizes = [1, 32], strides = [1, 1]} : vector<1x128xf32> to vector<1x32xf32>
    %20 = arith.mulf %17, %4 : vector<1x32xf32>
    %21 = arith.mulf %16, %18 : vector<1x32xf32>
    %22 = arith.addf %20, %21 : vector<1x32xf32>
    %23 = math.tanh %22 : vector<1x32xf32>
    %24 = arith.mulf %19, %23 : vector<1x32xf32>
    %c1 = arith.constant 1 : index
    %25 = memref.load %arg0[%c1] : memref<8xi32, #tpu.memory_space<smem>>
    %26 = arith.index_cast %25 : i32 to index
    %c0_8 = arith.constant 0 : index
    %27 = vector.load %arg1[%26, %c0_8] : memref<50x128xf32, #tpu.memory_space<vmem>>, vector<1x128xf32>
    %cst_9 = arith.constant dense<0.000000e+00> : vector<1x128xf32>
    %28 = tpu.matmul %24, %0, %cst_9 {dimension_numbers = #tpu.dot_dimension_numbers<[1], [0], [0], [1], [0, 0, 1, 1], [], []>} : vector<1x32xf32>, vector<32x128xf32>, vector<1x128xf32> -> vector<1x128xf32>
    %29 = arith.addf %27, %28 : vector<1x128xf32>
    %30 = arith.negf %29 : vector<1x128xf32>
    %31 = math.exp %30 : vector<1x128xf32>
    %cst_10 = arith.constant 1.000000e+00 : f32
    %32 = vector.broadcast %cst_10 : f32 to vector<1x128xf32>
    %33 = arith.addf %32, %31 : vector<1x128xf32>
    %34 = arith.divf %32, %33 : vector<1x128xf32>
    %35 = math.tanh %29 : vector<1x128xf32>
    %36 = vector.extract_strided_slice %34 {offsets = [0, 0], sizes = [1, 32], strides = [1, 1]} : vector<1x128xf32> to vector<1x32xf32>
    %37 = vector.extract_strided_slice %34 {offsets = [0, 32], sizes = [1, 32], strides = [1, 1]} : vector<1x128xf32> to vector<1x32xf32>
    %38 = vector.extract_strided_slice %35 {offsets = [0, 64], sizes = [1, 32], strides = [1, 1]} : vector<1x128xf32> to vector<1x32xf32>
    %39 = vector.extract_strided_slice %34 {offsets = [0, 96], sizes = [1, 32], strides = [1, 1]} : vector<1x128xf32> to vector<1x32xf32>
    %40 = arith.mulf %37, %22 : vector<1x32xf32>
    %41 = arith.mulf %36, %38 : vector<1x32xf32>
    %42 = arith.addf %40, %41 : vector<1x32xf32>
    %43 = math.tanh %42 : vector<1x32xf32>
    %44 = arith.mulf %39, %43 : vector<1x32xf32>
    %c2 = arith.constant 2 : index
    %45 = memref.load %arg0[%c2] : memref<8xi32, #tpu.memory_space<smem>>
    %46 = arith.index_cast %45 : i32 to index
    %c0_11 = arith.constant 0 : index
    %47 = vector.load %arg1[%46, %c0_11] : memref<50x128xf32, #tpu.memory_space<vmem>>, vector<1x128xf32>
    %cst_12 = arith.constant dense<0.000000e+00> : vector<1x128xf32>
    %48 = tpu.matmul %44, %0, %cst_12 {dimension_numbers = #tpu.dot_dimension_numbers<[1], [0], [0], [1], [0, 0, 1, 1], [], []>} : vector<1x32xf32>, vector<32x128xf32>, vector<1x128xf32> -> vector<1x128xf32>
    %49 = arith.addf %47, %48 : vector<1x128xf32>
    %50 = arith.negf %49 : vector<1x128xf32>
    %51 = math.exp %50 : vector<1x128xf32>
    %cst_13 = arith.constant 1.000000e+00 : f32
    %52 = vector.broadcast %cst_13 : f32 to vector<1x128xf32>
    %53 = arith.addf %52, %51 : vector<1x128xf32>
    %54 = arith.divf %52, %53 : vector<1x128xf32>
    %55 = math.tanh %49 : vector<1x128xf32>
    %56 = vector.extract_strided_slice %54 {offsets = [0, 0], sizes = [1, 32], strides = [1, 1]} : vector<1x128xf32> to vector<1x32xf32>
    %57 = vector.extract_strided_slice %54 {offsets = [0, 32], sizes = [1, 32], strides = [1, 1]} : vector<1x128xf32> to vector<1x32xf32>
    %58 = vector.extract_strided_slice %55 {offsets = [0, 64], sizes = [1, 32], strides = [1, 1]} : vector<1x128xf32> to vector<1x32xf32>
    %59 = vector.extract_strided_slice %54 {offsets = [0, 96], sizes = [1, 32], strides = [1, 1]} : vector<1x128xf32> to vector<1x32xf32>
    %60 = arith.mulf %57, %42 : vector<1x32xf32>
    %61 = arith.mulf %56, %58 : vector<1x32xf32>
    %62 = arith.addf %60, %61 : vector<1x32xf32>
    %63 = math.tanh %62 : vector<1x32xf32>
    %64 = arith.mulf %59, %63 : vector<1x32xf32>
    %c3 = arith.constant 3 : index
    %65 = memref.load %arg0[%c3] : memref<8xi32, #tpu.memory_space<smem>>
    %66 = arith.index_cast %65 : i32 to index
    %c0_14 = arith.constant 0 : index
    %67 = vector.load %arg1[%66, %c0_14] : memref<50x128xf32, #tpu.memory_space<vmem>>, vector<1x128xf32>
    %cst_15 = arith.constant dense<0.000000e+00> : vector<1x128xf32>
    %68 = tpu.matmul %64, %0, %cst_15 {dimension_numbers = #tpu.dot_dimension_numbers<[1], [0], [0], [1], [0, 0, 1, 1], [], []>} : vector<1x32xf32>, vector<32x128xf32>, vector<1x128xf32> -> vector<1x128xf32>
    %69 = arith.addf %67, %68 : vector<1x128xf32>
    %70 = arith.negf %69 : vector<1x128xf32>
    %71 = math.exp %70 : vector<1x128xf32>
    %cst_16 = arith.constant 1.000000e+00 : f32
    %72 = vector.broadcast %cst_16 : f32 to vector<1x128xf32>
    %73 = arith.addf %72, %71 : vector<1x128xf32>
    %74 = arith.divf %72, %73 : vector<1x128xf32>
    %75 = math.tanh %69 : vector<1x128xf32>
    %76 = vector.extract_strided_slice %74 {offsets = [0, 0], sizes = [1, 32], strides = [1, 1]} : vector<1x128xf32> to vector<1x32xf32>
    %77 = vector.extract_strided_slice %74 {offsets = [0, 32], sizes = [1, 32], strides = [1, 1]} : vector<1x128xf32> to vector<1x32xf32>
    %78 = vector.extract_strided_slice %75 {offsets = [0, 64], sizes = [1, 32], strides = [1, 1]} : vector<1x128xf32> to vector<1x32xf32>
    %79 = vector.extract_strided_slice %74 {offsets = [0, 96], sizes = [1, 32], strides = [1, 1]} : vector<1x128xf32> to vector<1x32xf32>
    %80 = arith.mulf %77, %62 : vector<1x32xf32>
    %81 = arith.mulf %76, %78 : vector<1x32xf32>
    %82 = arith.addf %80, %81 : vector<1x32xf32>
    %83 = math.tanh %82 : vector<1x32xf32>
    %84 = arith.mulf %79, %83 : vector<1x32xf32>
    %c4 = arith.constant 4 : index
    %85 = memref.load %arg0[%c4] : memref<8xi32, #tpu.memory_space<smem>>
    %86 = arith.index_cast %85 : i32 to index
    %c0_17 = arith.constant 0 : index
    %87 = vector.load %arg1[%86, %c0_17] : memref<50x128xf32, #tpu.memory_space<vmem>>, vector<1x128xf32>
    %cst_18 = arith.constant dense<0.000000e+00> : vector<1x128xf32>
    %88 = tpu.matmul %84, %0, %cst_18 {dimension_numbers = #tpu.dot_dimension_numbers<[1], [0], [0], [1], [0, 0, 1, 1], [], []>} : vector<1x32xf32>, vector<32x128xf32>, vector<1x128xf32> -> vector<1x128xf32>
    %89 = arith.addf %87, %88 : vector<1x128xf32>
    %90 = arith.negf %89 : vector<1x128xf32>
    %91 = math.exp %90 : vector<1x128xf32>
    %cst_19 = arith.constant 1.000000e+00 : f32
    %92 = vector.broadcast %cst_19 : f32 to vector<1x128xf32>
    %93 = arith.addf %92, %91 : vector<1x128xf32>
    %94 = arith.divf %92, %93 : vector<1x128xf32>
    %95 = math.tanh %89 : vector<1x128xf32>
    %96 = vector.extract_strided_slice %94 {offsets = [0, 0], sizes = [1, 32], strides = [1, 1]} : vector<1x128xf32> to vector<1x32xf32>
    %97 = vector.extract_strided_slice %94 {offsets = [0, 32], sizes = [1, 32], strides = [1, 1]} : vector<1x128xf32> to vector<1x32xf32>
    %98 = vector.extract_strided_slice %95 {offsets = [0, 64], sizes = [1, 32], strides = [1, 1]} : vector<1x128xf32> to vector<1x32xf32>
    %99 = vector.extract_strided_slice %94 {offsets = [0, 96], sizes = [1, 32], strides = [1, 1]} : vector<1x128xf32> to vector<1x32xf32>
    %100 = arith.mulf %97, %82 : vector<1x32xf32>
    %101 = arith.mulf %96, %98 : vector<1x32xf32>
    %102 = arith.addf %100, %101 : vector<1x32xf32>
    %103 = math.tanh %102 : vector<1x32xf32>
    %104 = arith.mulf %99, %103 : vector<1x32xf32>
    %c5 = arith.constant 5 : index
    %105 = memref.load %arg0[%c5] : memref<8xi32, #tpu.memory_space<smem>>
    %106 = arith.index_cast %105 : i32 to index
    %c0_20 = arith.constant 0 : index
    %107 = vector.load %arg1[%106, %c0_20] : memref<50x128xf32, #tpu.memory_space<vmem>>, vector<1x128xf32>
    %cst_21 = arith.constant dense<0.000000e+00> : vector<1x128xf32>
    %108 = tpu.matmul %104, %0, %cst_21 {dimension_numbers = #tpu.dot_dimension_numbers<[1], [0], [0], [1], [0, 0, 1, 1], [], []>} : vector<1x32xf32>, vector<32x128xf32>, vector<1x128xf32> -> vector<1x128xf32>
    %109 = arith.addf %107, %108 : vector<1x128xf32>
    %110 = arith.negf %109 : vector<1x128xf32>
    %111 = math.exp %110 : vector<1x128xf32>
    %cst_22 = arith.constant 1.000000e+00 : f32
    %112 = vector.broadcast %cst_22 : f32 to vector<1x128xf32>
    %113 = arith.addf %112, %111 : vector<1x128xf32>
    %114 = arith.divf %112, %113 : vector<1x128xf32>
    %115 = math.tanh %109 : vector<1x128xf32>
    %116 = vector.extract_strided_slice %114 {offsets = [0, 0], sizes = [1, 32], strides = [1, 1]} : vector<1x128xf32> to vector<1x32xf32>
    %117 = vector.extract_strided_slice %114 {offsets = [0, 32], sizes = [1, 32], strides = [1, 1]} : vector<1x128xf32> to vector<1x32xf32>
    %118 = vector.extract_strided_slice %115 {offsets = [0, 64], sizes = [1, 32], strides = [1, 1]} : vector<1x128xf32> to vector<1x32xf32>
    %119 = vector.extract_strided_slice %114 {offsets = [0, 96], sizes = [1, 32], strides = [1, 1]} : vector<1x128xf32> to vector<1x32xf32>
    %120 = arith.mulf %117, %102 : vector<1x32xf32>
    %121 = arith.mulf %116, %118 : vector<1x32xf32>
    %122 = arith.addf %120, %121 : vector<1x32xf32>
    %123 = math.tanh %122 : vector<1x32xf32>
    %124 = arith.mulf %119, %123 : vector<1x32xf32>
    %c6 = arith.constant 6 : index
    %125 = memref.load %arg0[%c6] : memref<8xi32, #tpu.memory_space<smem>>
    %126 = arith.index_cast %125 : i32 to index
    %c0_23 = arith.constant 0 : index
    %127 = vector.load %arg1[%126, %c0_23] : memref<50x128xf32, #tpu.memory_space<vmem>>, vector<1x128xf32>
    %cst_24 = arith.constant dense<0.000000e+00> : vector<1x128xf32>
    %128 = tpu.matmul %124, %0, %cst_24 {dimension_numbers = #tpu.dot_dimension_numbers<[1], [0], [0], [1], [0, 0, 1, 1], [], []>} : vector<1x32xf32>, vector<32x128xf32>, vector<1x128xf32> -> vector<1x128xf32>
    %129 = arith.addf %127, %128 : vector<1x128xf32>
    %130 = arith.negf %129 : vector<1x128xf32>
    %131 = math.exp %130 : vector<1x128xf32>
    %cst_25 = arith.constant 1.000000e+00 : f32
    %132 = vector.broadcast %cst_25 : f32 to vector<1x128xf32>
    %133 = arith.addf %132, %131 : vector<1x128xf32>
    %134 = arith.divf %132, %133 : vector<1x128xf32>
    %135 = math.tanh %129 : vector<1x128xf32>
    %136 = vector.extract_strided_slice %134 {offsets = [0, 0], sizes = [1, 32], strides = [1, 1]} : vector<1x128xf32> to vector<1x32xf32>
    %137 = vector.extract_strided_slice %134 {offsets = [0, 32], sizes = [1, 32], strides = [1, 1]} : vector<1x128xf32> to vector<1x32xf32>
    %138 = vector.extract_strided_slice %135 {offsets = [0, 64], sizes = [1, 32], strides = [1, 1]} : vector<1x128xf32> to vector<1x32xf32>
    %139 = vector.extract_strided_slice %134 {offsets = [0, 96], sizes = [1, 32], strides = [1, 1]} : vector<1x128xf32> to vector<1x32xf32>
    %140 = arith.mulf %137, %122 : vector<1x32xf32>
    %141 = arith.mulf %136, %138 : vector<1x32xf32>
    %142 = arith.addf %140, %141 : vector<1x32xf32>
    %143 = math.tanh %142 : vector<1x32xf32>
    %144 = arith.mulf %139, %143 : vector<1x32xf32>
    %c7 = arith.constant 7 : index
    %145 = memref.load %arg0[%c7] : memref<8xi32, #tpu.memory_space<smem>>
    %146 = arith.index_cast %145 : i32 to index
    %c0_26 = arith.constant 0 : index
    %147 = vector.load %arg1[%146, %c0_26] : memref<50x128xf32, #tpu.memory_space<vmem>>, vector<1x128xf32>
    %cst_27 = arith.constant dense<0.000000e+00> : vector<1x128xf32>
    %148 = tpu.matmul %144, %0, %cst_27 {dimension_numbers = #tpu.dot_dimension_numbers<[1], [0], [0], [1], [0, 0, 1, 1], [], []>} : vector<1x32xf32>, vector<32x128xf32>, vector<1x128xf32> -> vector<1x128xf32>
    %149 = arith.addf %147, %148 : vector<1x128xf32>
    %150 = arith.negf %149 : vector<1x128xf32>
    %151 = math.exp %150 : vector<1x128xf32>
    %cst_28 = arith.constant 1.000000e+00 : f32
    %152 = vector.broadcast %cst_28 : f32 to vector<1x128xf32>
    %153 = arith.addf %152, %151 : vector<1x128xf32>
    %154 = arith.divf %152, %153 : vector<1x128xf32>
    %155 = math.tanh %149 : vector<1x128xf32>
    %156 = vector.extract_strided_slice %154 {offsets = [0, 0], sizes = [1, 32], strides = [1, 1]} : vector<1x128xf32> to vector<1x32xf32>
    %157 = vector.extract_strided_slice %154 {offsets = [0, 32], sizes = [1, 32], strides = [1, 1]} : vector<1x128xf32> to vector<1x32xf32>
    %158 = vector.extract_strided_slice %155 {offsets = [0, 64], sizes = [1, 32], strides = [1, 1]} : vector<1x128xf32> to vector<1x32xf32>
    %159 = vector.extract_strided_slice %154 {offsets = [0, 96], sizes = [1, 32], strides = [1, 1]} : vector<1x128xf32> to vector<1x32xf32>
    %160 = arith.mulf %157, %142 : vector<1x32xf32>
    %161 = arith.mulf %156, %158 : vector<1x32xf32>
    %162 = arith.addf %160, %161 : vector<1x32xf32>
    %163 = math.tanh %162 : vector<1x32xf32>
    %164 = arith.mulf %159, %163 : vector<1x32xf32>
    %cst_29 = arith.constant dense<0.000000e+00> : vector<1x128xf32>
    %165 = tpu.matmul %164, %1, %cst_29 {dimension_numbers = #tpu.dot_dimension_numbers<[1], [0], [0], [1], [0, 0, 1, 1], [], []>} : vector<1x32xf32>, vector<32x128xf32>, vector<1x128xf32> -> vector<1x128xf32>
    %166 = arith.addf %165, %2 : vector<1x128xf32>
    %cst_30 = arith.constant dense<0xFF800000> : vector<1xf32>
    %167 = vector.multi_reduction <maximumf>, %166, %cst_30 [1] : vector<1x128xf32> to vector<1xf32>
    %168 = vector.shape_cast %167 : vector<1xf32> to vector<1x1xf32>
    %169 = vector.broadcast %168 : vector<1x1xf32> to vector<1x128xf32>
    %170 = arith.subf %166, %169 : vector<1x128xf32>
    %171 = math.exp %170 : vector<1x128xf32>
    %cst_31 = arith.constant dense<0.000000e+00> : vector<1xf32>
    %172 = vector.multi_reduction <add>, %171, %cst_31 [1] : vector<1x128xf32> to vector<1xf32>
    %173 = vector.shape_cast %172 : vector<1xf32> to vector<1x1xf32>
    %174 = vector.broadcast %173 : vector<1x1xf32> to vector<1x128xf32>
    %175 = arith.divf %171, %174 : vector<1x128xf32>
    %c0_32 = arith.constant 0 : index
    %c0_33 = arith.constant 0 : index
    %176 = vector.load %arg3[%c0_32, %c0_33] : memref<1x128xf32, #tpu.memory_space<vmem>>, vector<1x128xf32>
    tpu.vector_store %arg3[%c0_32, %c0_33], %175 {strides = array<i32>} : memref<1x128xf32, #tpu.memory_space<vmem>>, vector<1x128xf32>,
    return
  }
}

</mosaic_0001>

<bundles_post_ra>
// kernel: tpu_custom_call.1
= control target key start
LH: loop header
LB: loop body
LE: loop exit
PB: predicated region body
PF: predicated region fallthrough
CT: control target
= control target key end

     0   :  { %8 = vsyncpa [#allocation5], 0  ;;  %s947_s0 = inlined_call_operand.hbm [shape: s32[8], index: 0, kind: input, shape index: {}]   ;;  %s948_s1 = inlined_call_operand.hbm [shape: f32[50,128], index: 1, kind: input, shape index: {}]   ;;  %s949_s2 = inlined_call_operand.hbm [shape: f32[65,128], index: 2, kind: input, shape index: {}]   ;;  %s950_s3 = inlined_call_operand.hbm [shape: f32[1,128], index: 3, kind: output, shape index: {}]  }
   0x1   :  { %9 = vsyncpa [#allocation3], 0 }
   0x2   :  { %10 = vsyncpa [#allocation8], 0 }
   0x3   :  { %11 = vsyncpa [#allocation4], 0  ;;  %s17_s14 = sshll.u32 %s947_s0, 4  ;;  %s25_s17 = sshll.u32 %s948_s1, 4  ;;  %s18_s14 = int_to_ptr.hbm [resolvable:$true] %s17_s14  ;;  %s26_s17 = int_to_ptr.hbm [resolvable:$true] %s25_s17 }
   0x4   :  { %s866_s18 = smov [#allocation2]   ;;  %s867_s19 = smov [#allocation6]  }
   0x5   :  { %20 = dma.hbm_to_smem %s18_s14, 16, %s866_s18, [#allocation5]  }
   0x6   :  { %s27_s20 = sshll.u32 %s867_s19, 4  ;;  %s868_s21 = smov 128   ;;  %s28_s20 = int_to_ptr.vmem [resolvable:$true] %s27_s20 }
   0x7   :  { %s869_s22 = smov 8   ;;  %s38_s25 = sshll.u32 %s949_s2, 4  ;;  %s39_s25 = int_to_ptr.hbm [resolvable:$true] %s38_s25 }
   0x8   :  { %33 = dma.hbm_to_vmem [thread:$0]  %s26_s17, 896, %s28_s20, [#allocation3], %s868_s21, %s868_s21, %s869_s22  }
   0x9   :  { %s870_s0 = smov [#allocation7]  }
   0xa   :  { %s40_s26 = sshll.u32 %s870_s0, 4  ;;  %s41_s26 = int_to_ptr.vmem [resolvable:$true] %s40_s26 }
   0xb   :  { %46 = dma.hbm_to_vmem [thread:$0]  %s39_s25, 1152, %s41_s26, [#allocation8], %s868_s21, %s868_s21, %s869_s22  }
   0xc   :  { %858 = dma.done.wait [#allocation5], 16  }
   0xd   :  { %859 = vsyncadd [#allocation5], 4294967280 }
   0xe   :  { %860 = dma.done.wait [#allocation3], 896  }
   0xf   :  { %861 = vsyncadd [#allocation3], 4294966400 }
  0x10   :  { %862 = dma.done.wait [#allocation8], 1152  }
  0x11   :  { %863 = vsyncadd [#allocation8], 4294966144 }
  0x12   :  { %59 = sfence }
  0x13   :  { %v63_v0 = vld [vmem:[#allocation7 + $0x18] sm:$0xff]  ;;  %v62_v1 = vld [vmem:[#allocation7 + $0x10] sm:$0xff]  ;;  %v61_v2 = vld [vmem:[#allocation7 + $0x8] sm:$0xff]  ;;  %v871_v4 = vmov 0.0   ;;  %s69_s1 = sld [smem:[#allocation2]]  ;;  %s872_s27 = smov 64  }
  0x14   :  { %88 = vmatpush.msra.mxu0 %v63_v0  ;;  %154 = vmatpush.msra.mxu1 %v63_v0  ;;  %v60_v3 = vld [vmem:[#allocation7] sm:$0xff]  ;;  %s873_s28 = smov 32   ;;  %vm72_vm4 = vcmask 261120   ;;  %s675_s29 = sld [smem:[#allocation2 + $0x1]] }
  0x15   :  { %220 = vmatpush.msra.mxu2 %v63_v0  ;;  %286 = vmatpush.msra.mxu3 %v63_v0  ;;  %s678_s4 = sld [smem:[#allocation2 + $0x2]]  ;;  %s874_s16 = smov [#allocation9]  }
  0x16   :  { %89 = vmatpush.msra.mxu0 %v62_v1  ;;  %155 = vmatpush.msra.mxu1 %v62_v1  ;;  %s681_s6 = sld [smem:[#allocation2 + $0x3]]  ;;  %s652_s17 = sshll.u32 %s874_s16, 4  ;;  %s653_s17 = int_to_ptr.vmem [resolvable:$true] %s652_s17 }
  0x17   :  { %221 = vmatpush.msra.mxu2 %v62_v1  ;;  %287 = vmatpush.msra.mxu3 %v62_v1  ;;  %s684_s8 = sld [smem:[#allocation2 + $0x4]]  ;;  %s654_s20 = sshll.u32 %s950_s3, 4  ;;  %s655_s20 = int_to_ptr.hbm [resolvable:$true] %s654_s20 }
  0x18   :  { %90 = vmatpush.msra.mxu0 %v61_v2  ;;  %156 = vmatpush.msra.mxu1 %v61_v2  ;;  %s687_s10 = sld [smem:[#allocation2 + $0x5]] }
  0x19   :  { %222 = vmatpush.msra.mxu2 %v61_v2  ;;  %288 = vmatpush.msra.mxu3 %v61_v2  ;;  %s70_s2 = scalar_lea.vmem [#allocation6], %s69_s1  ;;  %s690_s12 = sld [smem:[#allocation2 + $0x6]] }
  0x1a   :  { %91 = vmatpush.msra.mxu0 %v60_v3  ;;  %157 = vmatpush.msra.mxu1 %v60_v3  ;;  %v71_v5 = vld [vmem:[%s70_s2] sm:$0x1]  ;;  %s135_s30 = scalar_lea.vmem [#allocation6], %s675_s29  ;;  %s693_s14 = sld [smem:[#allocation2 + $0x7]] }
  0x1b   :  { %92 = vmatmul.f32.vlgmr.msra.gmra.mxu0 %v871_v4  ;;  %223 = vmatpush.msra.mxu2 %v60_v3  ;;  %v136_v31 = vld [vmem:[%s135_s30] sm:$0x1]  ;;  %s201_s5 = scalar_lea.vmem [#allocation6], %s678_s4 }
  0x1c   :  { %289 = vmatpush.msra.mxu3 %v60_v3  ;;  %352 = vmatpush.msrb.mxu0 %v63_v0  ;;  %v202_v57 = vld [vmem:[%s201_s5] sm:$0x1]  ;;  %s267_s7 = scalar_lea.vmem [#allocation6], %s681_s6 }
  0x1d   :  { %418 = vmatpush.msrb.mxu1 %v63_v0  ;;  %484 = vmatpush.msrb.mxu2 %v63_v0  ;;  %s333_s9 = scalar_lea.vmem [#allocation6], %s684_s8 }
  0x1e   :  { %353 = vmatpush.msrb.mxu0 %v62_v1  ;;  %550 = vmatpush.msrb.mxu3 %v63_v0  ;;  %s399_s11 = scalar_lea.vmem [#allocation6], %s687_s10 }
  0x1f   :  { %419 = vmatpush.msrb.mxu1 %v62_v1  ;;  %485 = vmatpush.msrb.mxu2 %v62_v1  ;;  %s465_s13 = scalar_lea.vmem [#allocation6], %s690_s12 }
  0x20   :  { %354 = vmatpush.msrb.mxu0 %v61_v2  ;;  %551 = vmatpush.msrb.mxu3 %v62_v1  ;;  %s531_s15 = scalar_lea.vmem [#allocation6], %s693_s14 }
  0x21   :  { %420 = vmatpush.msrb.mxu1 %v61_v2  ;;  %486 = vmatpush.msrb.mxu2 %v61_v2 }
  0x22   :  { %355 = vmatpush.msrb.mxu0 %v60_v3  ;;  %552 = vmatpush.msrb.mxu3 %v61_v2 }
  0x23   :  { %421 = vmatpush.msrb.mxu1 %v60_v3  ;;  %487 = vmatpush.msrb.mxu2 %v60_v3 }
  0x24   :  { %553 = vmatpush.msrb.mxu3 %v60_v3 }
  0x98   :  { %v93_v6 = vpop.f32.mrf.mxu0 }
  0x99   :  { %v96_v7 = vadd.f32 %v93_v6, %v71_v5 }
  0x9b   :  { %706 = vtanh.f32 %v96_v7  ;;  %v674_v9 = vmul.f32 -1.442695, %v96_v7 }
  0x9d   :  { %708 = vpow2.f32 %v674_v9 }
  0xa1   :  { %v707_v8 = vpop.eup %706 }
  0xa2   :  { %119 = vrot.lane.b32.xlu0 %v707_v8, %s872_s27 }
  0xa3   :  { %v709_v10 = vpop.eup %708 }
  0xa4   :  { %v100_v11 = vadd.f32 1.0, %v709_v10 }
  0xa6   :  { %710 = vrcp.f32 %v100_v11  ;;  %v112_v17 = vand.u32 2147483648, %v100_v11  ;;  %vm106_vm1 = vweird.f32 %v100_v11  ;;  %v110_v18 = vand.u32 2147483647, %v100_v11 }
  0xa8   :  { %v113_v20 = vor.u32 1.1754944e-38, %v112_v17  ;;  %vm111_vm3 = vcmp.eq.f32.partialorder %v110_v18, 8.507059e+37 }
  0xac   :  { %v711_v12 = vpop.eup %710 }
  0xad   :  { %v102_v13 = vmul.f32 %v711_v12, %v100_v11  ;;  %vm107_vm0 = vweird.f32 %v711_v12 }
  0xae   :  { %vm108_vm2 = vmor %vm106_vm1, %vm107_vm0 }
  0xaf   :  { %v103_v14 = vsub.f32 1.0, %v102_v13 }
  0xb1   :  { %v104_v15 = vmul.f32 %v711_v12, %v103_v14 }
  0xb3   :  { %v105_v16 = vadd.f32 %v711_v12, %v104_v15 }
  0xb5   :  { %v109_v19 = vsel %vm108_vm2, %v711_v12, %v105_v16 }
  0xb6   :  { %v114_v22 = vsel %vm111_vm3, %v113_v20, %v109_v19  ;;  %v268_v19 = vld [vmem:[%s267_s7] sm:$0x1] }
  0xb7   :  { %v117_v24 = vmul.f32 0.0, %v114_v22 }
 0x114   :  { %v120_v21 = vpop.permute.xlu0 %119 }
 0x115   :  { %v122_v23 = vmul.f32 %v120_v21, %v114_v22 }
 0x117   :  { %124 = vrot.lane.b32.xlu0 %v122_v23, %s873_s28 }
 0x189   :  { %v125_v25 = vpop.permute.xlu0 %124 }
 0x18a   :  { %v127_v26 = vadd.f32 %v125_v25, %v117_v24 }
 0x18c   :  { %712 = vtanh.f32 %v127_v26 }
 0x192   :  { %v713_v27 = vpop.eup %712 }
 0x193   :  { %130 = vrot.lane.b32.xlu1 %v713_v27, %s872_s27 }
 0x205   :  { %v131_v28 = vpop.permute.xlu1 %130 }
 0x206   :  { %v133_v29 = vmul.f32 %v131_v28, %v114_v22 }
 0x208   :  { %138 = vrot.lane.b32.xlu1 %v133_v29, %s873_s28 }
 0x27a   :  { %v139_v30 = vpop.permute.xlu1 %138 }
 0x27b   :  { %676 = vmatmul.msk.f32.vlgmr.msra.gmra.mxu1 %vm72_vm4, %v139_v30 }
 0x2f8   :  { %v159_v32 = vpop.f32.mrf.mxu1 }
 0x2f9   :  { %v162_v33 = vadd.f32 %v159_v32, %v136_v31 }
 0x2fb   :  { %714 = vtanh.f32 %v162_v33  ;;  %v677_v35 = vmul.f32 -1.442695, %v162_v33 }
 0x2fd   :  { %716 = vpow2.f32 %v677_v35 }
 0x301   :  { %v715_v34 = vpop.eup %714 }
 0x302   :  { %185 = vrot.lane.b32.xlu2 %v715_v34, %s872_s27 }
 0x303   :  { %v717_v36 = vpop.eup %716 }
 0x304   :  { %v166_v37 = vadd.f32 1.0, %v717_v36 }
 0x306   :  { %718 = vrcp.f32 %v166_v37  ;;  %v178_v43 = vand.u32 2147483648, %v166_v37  ;;  %vm172_vm6 = vweird.f32 %v166_v37  ;;  %v176_v44 = vand.u32 2147483647, %v166_v37 }
 0x308   :  { %v179_v46 = vor.u32 1.1754944e-38, %v178_v43  ;;  %vm177_vm8 = vcmp.eq.f32.partialorder %v176_v44, 8.507059e+37 }
 0x30c   :  { %v719_v38 = vpop.eup %718 }
 0x30d   :  { %v168_v39 = vmul.f32 %v719_v38, %v166_v37  ;;  %vm173_vm5 = vweird.f32 %v719_v38 }
 0x30e   :  { %vm174_vm7 = vmor %vm172_vm6, %vm173_vm5 }
 0x30f   :  { %v169_v40 = vsub.f32 1.0, %v168_v39 }
 0x311   :  { %v170_v41 = vmul.f32 %v719_v38, %v169_v40 }
 0x313   :  { %v171_v42 = vadd.f32 %v719_v38, %v170_v41 }
 0x315   :  { %v175_v45 = vsel %vm174_vm7, %v719_v38, %v171_v42 }
 0x316   :  { %v180_v48 = vsel %vm177_vm8, %v179_v46, %v175_v45  ;;  %v334_v45 = vld [vmem:[%s333_s9] sm:$0x1] }
 0x317   :  { %v183_v50 = vmul.f32 %v180_v48, %v127_v26 }
 0x35c   :  { %v186_v47 = vpop.permute.xlu2 %185 }
 0x35d   :  { %v188_v49 = vmul.f32 %v186_v47, %v180_v48 }
 0x35f   :  { %190 = vrot.lane.b32.xlu2 %v188_v49, %s873_s28 }
 0x3b9   :  { %v191_v51 = vpop.permute.xlu2 %190 }
 0x3ba   :  { %v193_v52 = vadd.f32 %v191_v51, %v183_v50 }
 0x3bc   :  { %720 = vtanh.f32 %v193_v52 }
 0x3c2   :  { %v721_v53 = vpop.eup %720 }
 0x3c3   :  { %196 = vrot.lane.b32.xlu0 %v721_v53, %s872_s27 }
 0x435   :  { %v197_v54 = vpop.permute.xlu0 %196 }
 0x436   :  { %v199_v55 = vmul.f32 %v197_v54, %v180_v48 }
 0x438   :  { %204 = vrot.lane.b32.xlu1 %v199_v55, %s873_s28 }
 0x4aa   :  { %v205_v56 = vpop.permute.xlu1 %204 }
 0x4ab   :  { %679 = vmatmul.msk.f32.vlgmr.msra.gmra.mxu2 %vm72_vm4, %v205_v56 }
 0x52e   :  { %v225_v58 = vpop.f32.mrf.mxu2 }
 0x52f   :  { %v228_v59 = vadd.f32 %v225_v58, %v202_v57 }
 0x531   :  { %722 = vtanh.f32 %v228_v59  ;;  %v680_v61 = vmul.f32 -1.442695, %v228_v59 }
 0x533   :  { %724 = vpow2.f32 %v680_v61 }
 0x537   :  { %v723_v60 = vpop.eup %722 }
 0x538   :  { %251 = vrot.lane.b32.xlu2 %v723_v60, %s872_s27 }
 0x539   :  { %v725_v62 = vpop.eup %724 }
 0x53a   :  { %v232_v63 = vadd.f32 1.0, %v725_v62 }
 0x53c   :  { %726 = vrcp.f32 %v232_v63  ;;  %v244_v5 = vand.u32 2147483648, %v232_v63  ;;  %vm238_vm10 = vweird.f32 %v232_v63  ;;  %v242_v6 = vand.u32 2147483647, %v232_v63 }
 0x53e   :  { %v245_v8 = vor.u32 1.1754944e-38, %v244_v5  ;;  %vm243_vm12 = vcmp.eq.f32.partialorder %v242_v6, 8.507059e+37 }
 0x542   :  { %v727_v0 = vpop.eup %726 }
 0x543   :  { %v234_v1 = vmul.f32 %v727_v0, %v232_v63  ;;  %vm239_vm9 = vweird.f32 %v727_v0 }
 0x544   :  { %vm240_vm11 = vmor %vm238_vm10, %vm239_vm9 }
 0x545   :  { %v235_v2 = vsub.f32 1.0, %v234_v1 }
 0x547   :  { %v236_v3 = vmul.f32 %v727_v0, %v235_v2 }
 0x549   :  { %v237_v4 = vadd.f32 %v727_v0, %v236_v3 }
 0x54b   :  { %v241_v7 = vsel %vm240_vm11, %v727_v0, %v237_v4 }
 0x54c   :  { %v246_v10 = vsel %vm243_vm12, %v245_v8, %v241_v7  ;;  %v400_v7 = vld [vmem:[%s399_s11] sm:$0x1] }
 0x54d   :  { %v249_v12 = vmul.f32 %v246_v10, %v193_v52 }
 0x592   :  { %v252_v9 = vpop.permute.xlu2 %251 }
 0x593   :  { %v254_v11 = vmul.f32 %v252_v9, %v246_v10 }
 0x595   :  { %256 = vrot.lane.b32.xlu0 %v254_v11, %s873_s28 }
 0x607   :  { %v257_v13 = vpop.permute.xlu0 %256 }
 0x608   :  { %v259_v14 = vadd.f32 %v257_v13, %v249_v12 }
 0x60a   :  { %728 = vtanh.f32 %v259_v14 }
 0x610   :  { %v729_v15 = vpop.eup %728 }
 0x611   :  { %262 = vrot.lane.b32.xlu1 %v729_v15, %s872_s27 }
 0x683   :  { %v263_v16 = vpop.permute.xlu1 %262 }
 0x684   :  { %v265_v17 = vmul.f32 %v263_v16, %v246_v10 }
 0x686   :  { %270 = vrot.lane.b32.xlu2 %v265_v17, %s873_s28 }
 0x6e0   :  { %v271_v18 = vpop.permute.xlu2 %270 }
 0x6e1   :  { %682 = vmatmul.msk.f32.vlgmr.msra.gmra.mxu3 %vm72_vm4, %v271_v18 }
 0x764   :  { %v291_v20 = vpop.f32.mrf.mxu3 }
 0x765   :  { %v294_v21 = vadd.f32 %v291_v20, %v268_v19 }
 0x767   :  { %730 = vtanh.f32 %v294_v21  ;;  %v683_v23 = vmul.f32 -1.442695, %v294_v21 }
 0x769   :  { %732 = vpow2.f32 %v683_v23 }
 0x76d   :  { %v731_v22 = vpop.eup %730 }
 0x76e   :  { %317 = vrot.lane.b32.xlu0 %v731_v22, %s872_s27 }
 0x76f   :  { %v733_v24 = vpop.eup %732 }
 0x770   :  { %v298_v25 = vadd.f32 1.0, %v733_v24 }
 0x772   :  { %734 = vrcp.f32 %v298_v25  ;;  %v310_v31 = vand.u32 2147483648, %v298_v25  ;;  %vm304_vm14 = vweird.f32 %v298_v25  ;;  %v308_v32 = vand.u32 2147483647, %v298_v25 }
 0x774   :  { %v311_v34 = vor.u32 1.1754944e-38, %v310_v31  ;;  %vm309_vm0 = vcmp.eq.f32.partialorder %v308_v32, 8.507059e+37 }
 0x778   :  { %v735_v26 = vpop.eup %734 }
 0x779   :  { %v300_v27 = vmul.f32 %v735_v26, %v298_v25  ;;  %vm305_vm13 = vweird.f32 %v735_v26 }
 0x77a   :  { %vm306_vm15 = vmor %vm304_vm14, %vm305_vm13 }
 0x77b   :  { %v301_v28 = vsub.f32 1.0, %v300_v27 }
 0x77d   :  { %v302_v29 = vmul.f32 %v735_v26, %v301_v28 }
 0x77f   :  { %v303_v30 = vadd.f32 %v735_v26, %v302_v29 }
 0x781   :  { %v307_v33 = vsel %vm306_vm15, %v735_v26, %v303_v30 }
 0x782   :  { %v312_v36 = vsel %vm309_vm0, %v311_v34, %v307_v33  ;;  %v466_v33 = vld [vmem:[%s465_s13] sm:$0x1] }
 0x783   :  { %v315_v38 = vmul.f32 %v312_v36, %v259_v14 }
 0x7e0   :  { %v318_v35 = vpop.permute.xlu0 %317 }
 0x7e1   :  { %v320_v37 = vmul.f32 %v318_v35, %v312_v36 }
 0x7e3   :  { %322 = vrot.lane.b32.xlu1 %v320_v37, %s873_s28 }
 0x855   :  { %v323_v39 = vpop.permute.xlu1 %322 }
 0x856   :  { %v325_v40 = vadd.f32 %v323_v39, %v315_v38 }
 0x858   :  { %736 = vtanh.f32 %v325_v40 }
 0x85e   :  { %v737_v41 = vpop.eup %736 }
 0x85f   :  { %328 = vrot.lane.b32.xlu2 %v737_v41, %s872_s27 }
 0x8b9   :  { %v329_v42 = vpop.permute.xlu2 %328 }
 0x8ba   :  { %v331_v43 = vmul.f32 %v329_v42, %v312_v36 }
 0x8bc   :  { %336 = vrot.lane.b32.xlu0 %v331_v43, %s873_s28 }
 0x92e   :  { %v337_v44 = vpop.permute.xlu0 %336 }
 0x92f   :  { %685 = vmatmul.msk.f32.vlgmr.msrb.gmra.mxu0 %vm72_vm4, %v337_v44 }
 0x9ac   :  { %v357_v46 = vpop.f32.mrf.mxu0 }
 0x9ad   :  { %v360_v47 = vadd.f32 %v357_v46, %v334_v45 }
 0x9af   :  { %738 = vtanh.f32 %v360_v47  ;;  %v686_v49 = vmul.f32 -1.442695, %v360_v47 }
 0x9b1   :  { %740 = vpow2.f32 %v686_v49 }
 0x9b5   :  { %v739_v48 = vpop.eup %738 }
 0x9b6   :  { %383 = vrot.lane.b32.xlu1 %v739_v48, %s872_s27 }
 0x9b7   :  { %v741_v50 = vpop.eup %740 }
 0x9b8   :  { %v364_v51 = vadd.f32 1.0, %v741_v50 }
 0x9ba   :  { %742 = vrcp.f32 %v364_v51  ;;  %v376_v57 = vand.u32 2147483648, %v364_v51  ;;  %vm370_vm2 = vweird.f32 %v364_v51  ;;  %v374_v58 = vand.u32 2147483647, %v364_v51 }
 0x9bc   :  { %v377_v60 = vor.u32 1.1754944e-38, %v376_v57  ;;  %vm375_vm5 = vcmp.eq.f32.partialorder %v374_v58, 8.507059e+37 }
 0x9c0   :  { %v743_v52 = vpop.eup %742 }
 0x9c1   :  { %v366_v53 = vmul.f32 %v743_v52, %v364_v51  ;;  %vm371_vm1 = vweird.f32 %v743_v52 }
 0x9c2   :  { %vm372_vm3 = vmor %vm370_vm2, %vm371_vm1  ;;  %vm621_vm2 = vcmask 1040384  }
 0x9c3   :  { %v367_v54 = vsub.f32 1.0, %v366_v53 }
 0x9c5   :  { %v368_v55 = vmul.f32 %v743_v52, %v367_v54 }
 0x9c7   :  { %v369_v56 = vadd.f32 %v743_v52, %v368_v55 }
 0x9c9   :  { %v373_v59 = vsel %vm372_vm3, %v743_v52, %v369_v56 }
 0x9ca   :  { %v378_v62 = vsel %vm375_vm5, %v377_v60, %v373_v59  ;;  %v532_v59 = vld [vmem:[%s531_s15] sm:$0x1] }
 0x9cb   :  { %v381_v0 = vmul.f32 %v378_v62, %v325_v40 }
 0xa28   :  { %v384_v61 = vpop.permute.xlu1 %383 }
 0xa29   :  { %v386_v63 = vmul.f32 %v384_v61, %v378_v62 }
 0xa2b   :  { %388 = vrot.lane.b32.xlu2 %v386_v63, %s873_s28 }
 0xa85   :  { %v389_v1 = vpop.permute.xlu2 %388 }
 0xa86   :  { %v391_v2 = vadd.f32 %v389_v1, %v381_v0 }
 0xa88   :  { %744 = vtanh.f32 %v391_v2 }
 0xa8e   :  { %v745_v3 = vpop.eup %744 }
 0xa8f   :  { %394 = vrot.lane.b32.xlu0 %v745_v3, %s872_s27 }
 0xb01   :  { %v395_v4 = vpop.permute.xlu0 %394 }
 0xb02   :  { %v397_v5 = vmul.f32 %v395_v4, %v378_v62 }
 0xb04   :  { %402 = vrot.lane.b32.xlu1 %v397_v5, %s873_s28 }
 0xb76   :  { %v403_v6 = vpop.permute.xlu1 %402 }
 0xb77   :  { %688 = vmatmul.msk.f32.vlgmr.msrb.gmra.mxu1 %vm72_vm4, %v403_v6 }
 0xbf4   :  { %v423_v8 = vpop.f32.mrf.mxu1 }
 0xbf5   :  { %v426_v9 = vadd.f32 %v423_v8, %v400_v7 }
 0xbf7   :  { %746 = vtanh.f32 %v426_v9  ;;  %v689_v11 = vmul.f32 -1.442695, %v426_v9 }
 0xbf9   :  { %748 = vpow2.f32 %v689_v11 }
 0xbfd   :  { %v747_v10 = vpop.eup %746 }
 0xbfe   :  { %449 = vrot.lane.b32.xlu2 %v747_v10, %s872_s27 }
 0xbff   :  { %v749_v12 = vpop.eup %748 }
 0xc00   :  { %v430_v13 = vadd.f32 1.0, %v749_v12 }
 0xc02   :  { %750 = vrcp.f32 %v430_v13  ;;  %v442_v19 = vand.u32 2147483648, %v430_v13  ;;  %vm436_vm7 = vweird.f32 %v430_v13  ;;  %v440_v20 = vand.u32 2147483647, %v430_v13 }
 0xc04   :  { %v443_v22 = vor.u32 1.1754944e-38, %v442_v19  ;;  %vm441_vm9 = vcmp.eq.f32.partialorder %v440_v20, 8.507059e+37  ;;  %v66_v19 = vld [vmem:[#allocation7 + $0x30] sm:$0xff]  ;;  %v65_v20 = vld [vmem:[#allocation7 + $0x28] sm:$0xff] }
 0xc08   :  { %v751_v14 = vpop.eup %750 }
 0xc09   :  { %v432_v15 = vmul.f32 %v751_v14, %v430_v13  ;;  %vm437_vm6 = vweird.f32 %v751_v14 }
 0xc0a   :  { %vm438_vm8 = vmor %vm436_vm7, %vm437_vm6 }
 0xc0b   :  { %v433_v16 = vsub.f32 1.0, %v432_v15 }
 0xc0d   :  { %v434_v17 = vmul.f32 %v751_v14, %v433_v16 }
 0xc0f   :  { %v435_v18 = vadd.f32 %v751_v14, %v434_v17 }
 0xc11   :  { %v439_v21 = vsel %vm438_vm8, %v751_v14, %v435_v18  ;;  %v67_v18 = vld [vmem:[#allocation7 + $0x38] sm:$0xff] }
 0xc12   :  { %v444_v24 = vsel %vm441_vm9, %v443_v22, %v439_v21  ;;  %613 = vmatpush.msra.mxu0 %v67_v18  ;;  %v64_v21 = vld [vmem:[#allocation7 + $0x20] sm:$0xff] }
 0xc13   :  { %v447_v26 = vmul.f32 %v444_v24, %v391_v2 }
 0xc14   :  { %614 = vmatpush.msra.mxu0 %v66_v19 }
 0xc16   :  { %615 = vmatpush.msra.mxu0 %v65_v20 }
 0xc18   :  { %616 = vmatpush.msra.mxu0 %v64_v21 }
 0xc58   :  { %v450_v23 = vpop.permute.xlu2 %449 }
 0xc59   :  { %v452_v25 = vmul.f32 %v450_v23, %v444_v24 }
 0xc5b   :  { %454 = vrot.lane.b32.xlu0 %v452_v25, %s873_s28  ;;  %v68_v25 = vld [vmem:[#allocation7 + $0x40] sm:$0x1] }
 0xccd   :  { %v455_v27 = vpop.permute.xlu0 %454 }
 0xcce   :  { %v457_v28 = vadd.f32 %v455_v27, %v447_v26 }
 0xcd0   :  { %752 = vtanh.f32 %v457_v28 }
 0xcd6   :  { %v753_v29 = vpop.eup %752 }
 0xcd7   :  { %460 = vrot.lane.b32.xlu1 %v753_v29, %s872_s27 }
 0xd49   :  { %v461_v30 = vpop.permute.xlu1 %460 }
 0xd4a   :  { %v463_v31 = vmul.f32 %v461_v30, %v444_v24 }
 0xd4c   :  { %468 = vrot.lane.b32.xlu2 %v463_v31, %s873_s28 }
 0xda6   :  { %v469_v32 = vpop.permute.xlu2 %468 }
 0xda7   :  { %691 = vmatmul.msk.f32.vlgmr.msrb.gmra.mxu2 %vm72_vm4, %v469_v32 }
 0xe2a   :  { %v489_v34 = vpop.f32.mrf.mxu2 }
 0xe2b   :  { %v492_v35 = vadd.f32 %v489_v34, %v466_v33 }
 0xe2d   :  { %754 = vtanh.f32 %v492_v35  ;;  %v692_v37 = vmul.f32 -1.442695, %v492_v35 }
 0xe2f   :  { %756 = vpow2.f32 %v692_v37 }
 0xe33   :  { %v755_v36 = vpop.eup %754 }
 0xe34   :  { %515 = vrot.lane.b32.xlu0 %v755_v36, %s872_s27 }
 0xe35   :  { %v757_v38 = vpop.eup %756 }
 0xe36   :  { %v496_v39 = vadd.f32 1.0, %v757_v38 }
 0xe38   :  { %758 = vrcp.f32 %v496_v39  ;;  %v508_v45 = vand.u32 2147483648, %v496_v39  ;;  %vm502_vm11 = vweird.f32 %v496_v39  ;;  %v506_v46 = vand.u32 2147483647, %v496_v39 }
 0xe3a   :  { %v509_v48 = vor.u32 1.1754944e-38, %v508_v45  ;;  %vm507_vm13 = vcmp.eq.f32.partialorder %v506_v46, 8.507059e+37 }
 0xe3e   :  { %v759_v40 = vpop.eup %758 }
 0xe3f   :  { %v498_v41 = vmul.f32 %v759_v40, %v496_v39  ;;  %vm503_vm10 = vweird.f32 %v759_v40 }
 0xe40   :  { %vm504_vm12 = vmor %vm502_vm11, %vm503_vm10 }
 0xe41   :  { %v499_v42 = vsub.f32 1.0, %v498_v41 }
 0xe43   :  { %v500_v43 = vmul.f32 %v759_v40, %v499_v42 }
 0xe45   :  { %v501_v44 = vadd.f32 %v759_v40, %v500_v43 }
 0xe47   :  { %v505_v47 = vsel %vm504_vm12, %v759_v40, %v501_v44 }
 0xe48   :  { %v510_v50 = vsel %vm507_vm13, %v509_v48, %v505_v47 }
 0xe49   :  { %v513_v52 = vmul.f32 %v510_v50, %v457_v28 }
 0xea6   :  { %v516_v49 = vpop.permute.xlu0 %515 }
 0xea7   :  { %v518_v51 = vmul.f32 %v516_v49, %v510_v50 }
 0xea9   :  { %520 = vrot.lane.b32.xlu1 %v518_v51, %s873_s28 }
 0xf1b   :  { %v521_v53 = vpop.permute.xlu1 %520 }
 0xf1c   :  { %v523_v54 = vadd.f32 %v521_v53, %v513_v52 }
 0xf1e   :  { %760 = vtanh.f32 %v523_v54 }
 0xf24   :  { %v761_v55 = vpop.eup %760 }
 0xf25   :  { %526 = vrot.lane.b32.xlu2 %v761_v55, %s872_s27 }
 0xf7f   :  { %v527_v56 = vpop.permute.xlu2 %526 }
 0xf80   :  { %v529_v57 = vmul.f32 %v527_v56, %v510_v50 }
 0xf82   :  { %534 = vrot.lane.b32.xlu0 %v529_v57, %s873_s28 }
 0xff4   :  { %v535_v58 = vpop.permute.xlu0 %534 }
 0xff5   :  { %694 = vmatmul.msk.f32.vlgmr.msrb.gmra.mxu3 %vm72_vm4, %v535_v58 }
0x1078   :  { %v555_v60 = vpop.f32.mrf.mxu3 }
0x1079   :  { %v558_v61 = vadd.f32 %v555_v60, %v532_v59 }
0x107b   :  { %762 = vtanh.f32 %v558_v61  ;;  %v695_v63 = vmul.f32 -1.442695, %v558_v61 }
0x107d   :  { %764 = vpow2.f32 %v695_v63 }
0x1081   :  { %v763_v62 = vpop.eup %762 }
0x1082   :  { %581 = vrot.lane.b32.xlu1 %v763_v62, %s872_s27 }
0x1083   :  { %v765_v0 = vpop.eup %764 }
0x1084   :  { %v562_v1 = vadd.f32 1.0, %v765_v0 }
0x1086   :  { %766 = vrcp.f32 %v562_v1  ;;  %v574_v7 = vand.u32 2147483648, %v562_v1  ;;  %vm568_vm15 = vweird.f32 %v562_v1  ;;  %v572_v8 = vand.u32 2147483647, %v562_v1 }
0x1088   :  { %v575_v10 = vor.u32 1.1754944e-38, %v574_v7  ;;  %vm573_vm1 = vcmp.eq.f32.partialorder %v572_v8, 8.507059e+37 }
0x108c   :  { %v767_v2 = vpop.eup %766 }
0x108d   :  { %v564_v3 = vmul.f32 %v767_v2, %v562_v1  ;;  %vm569_vm14 = vweird.f32 %v767_v2 }
0x108e   :  { %vm570_vm0 = vmor %vm568_vm15, %vm569_vm14 }
0x108f   :  { %v565_v4 = vsub.f32 1.0, %v564_v3 }
0x1091   :  { %v566_v5 = vmul.f32 %v767_v2, %v565_v4 }
0x1093   :  { %v567_v6 = vadd.f32 %v767_v2, %v566_v5 }
0x1095   :  { %v571_v9 = vsel %vm570_vm0, %v767_v2, %v567_v6 }
0x1096   :  { %v576_v12 = vsel %vm573_vm1, %v575_v10, %v571_v9 }
0x1097   :  { %v579_v14 = vmul.f32 %v576_v12, %v523_v54 }
0x10f4   :  { %v582_v11 = vpop.permute.xlu1 %581 }
0x10f5   :  { %v584_v13 = vmul.f32 %v582_v11, %v576_v12 }
0x10f7   :  { %586 = vrot.lane.b32.xlu2 %v584_v13, %s873_s28 }
0x1151   :  { %v587_v15 = vpop.permute.xlu2 %586 }
0x1152   :  { %v589_v16 = vadd.f32 %v587_v15, %v579_v14 }
0x1154   :  { %768 = vtanh.f32 %v589_v16 }
0x115a   :  { %v769_v17 = vpop.eup %768 }
0x115b   :  { %592 = vrot.lane.b32.xlu0 %v769_v17, %s872_s27 }
0x11cd   :  { %v593_v22 = vpop.permute.xlu0 %592 }
0x11ce   :  { %v595_v23 = vmul.f32 %v593_v22, %v576_v12 }
0x11d0   :  { %597 = vrot.lane.b32.xlu1 %v595_v23, %s873_s28 }
0x1242   :  { %v598_v24 = vpop.permute.xlu1 %597 }
0x1243   :  { %696 = vmatmul.msk.f32.vlgmr.msra.gmra.mxu0 %vm72_vm4, %v598_v24 }
0x12c0   :  { %v618_v26 = vpop.f32.mrf.mxu0 }
0x12c1   :  { %v619_v27 = vadd.f32 %v618_v26, %v68_v25 }
0x12c3   :  { %v622_v28 = vsel %vm621_vm2, %v619_v27, -inf }
0x12c4   :  { %623 = vmax.xlane.f32.xlu2 %v622_v28 }
0x1337   :  { %v624_v29 = vpop.xlane.xlu2 %623 }
0x1338   :  { %v625_v30 = vsub.f32 %v619_v27, %v624_v29 }
0x133a   :  { %v626_v31 = vmul.f32 1.442695, %v625_v30 }
0x133c   :  { %770 = vpow2.f32 %v626_v31 }
0x1342   :  { %v771_v32 = vpop.eup %770 }
0x1343   :  { %v628_v33 = vsel %vm621_vm2, %v771_v32, 0.0 }
0x1344   :  { %629 = vadd.xlane.f32.xlu0 %v628_v33 }
0x13b7   :  { %v630_v34 = vpop.xlane.xlu0 %629 }
0x13b8   :  { %772 = vrcp.f32 %v630_v34  ;;  %v642_v38 = vand.u32 2147483648, %v630_v34  ;;  %v640_v40 = vand.u32 2147483647, %v630_v34  ;;  %vm636_vm3 = vweird.f32 %v630_v34 }
0x13ba   :  { %v643_v42 = vor.u32 1.1754944e-38, %v642_v38  ;;  %vm641_vm6 = vcmp.eq.f32.partialorder %v640_v40, 8.507059e+37 }
0x13be   :  { %v773_v35 = vpop.eup %772 }
0x13bf   :  { %v632_v36 = vmul.f32 %v773_v35, %v630_v34  ;;  %vm637_vm4 = vweird.f32 %v773_v35 }
0x13c0   :  { %vm638_vm5 = vmor %vm636_vm3, %vm637_vm4 }
0x13c1   :  { %v633_v37 = vsub.f32 1.0, %v632_v36 }
0x13c3   :  { %v634_v39 = vmul.f32 %v773_v35, %v633_v37 }
0x13c5   :  { %v635_v41 = vadd.f32 %v773_v35, %v634_v39 }
0x13c7   :  { %v639_v43 = vsel %vm638_vm5, %v773_v35, %v635_v41 }
0x13c8   :  { %v644_v44 = vsel %vm641_vm6, %v643_v42, %v639_v43 }
0x13c9   :  { %v645_v45 = vmul.f32 %v771_v32, %v644_v44 }
0x13cb   :  { %646 = vst [vmem:[#allocation9] sm:$0x1] %v645_v45 }
0x13cc   :  { %657 = dma.vmem_to_hbm [thread:$0]  %s653_s17, 16, %s655_s20, [#allocation4]  }
0x13cd   :  { %864 = dma.done.wait [#allocation4], 16  }
0x13ce   :  { %865 = vsyncadd [#allocation4], 4294967280 }
0x13cf   :  { %662 = vsyncpa [#allocation3], 1 }
0x13d0   :  { %663 = vsyncpa [#allocation8], 1 }
0x13d1   :  { %664 = vsyncpa [#allocation4], 1 }
0x13d2   :  { %665 = vsyncpa [#allocation5], 1 }

</bundles_post_ra>
